<compile_context>
chip_gen: v6e
topology: v6e:2x2x1
jax: 0.10.0
libtpu: 0.0.40
codegen_flags: <defaults>
</compile_context>

<pallas_src>
import functools
import math

import jax
import jax.numpy as jnp
from jax import lax
from jax.experimental import pallas as pl
from jax.experimental.pallas import tpu as pltpu


def _round_up(x, m):
    return ((x + m - 1) // m) * m


def _pad2d(x, rows, cols, fill=0):
    r, c = x.shape
    if r == rows and c == cols:
        return x
    return jnp.full((rows, cols), fill, x.dtype).at[:r, :c].set(x)


def _vmem_limit_bytes():
    # ~3/4 of physical VMEM, capped at 96 MiB (v5e/v6e: 128 MiB phys, v7x: 64 MiB).
    try:
        cap = pltpu.get_tpu_info().vmem_capacity_bytes
    except Exception:
        cap = 64 * 1024 * 1024
    return int(min(cap * 3 // 4, 96 * 1024 * 1024))


def _scores_softmax_kernel(q_ref, k_ref, qr_ref, rel_ref, mask_ref, out_ref,
                           *, num_rel):
    # Single bf16 MXU matmul per tile, f32 accumulation, contracted RHS dim
    # (no explicit transpose through the XLU).  1/sqrt(d_k) is folded into q.
    qk = lax.dot_general(q_ref[...], k_ref[...], (((1,), (1,)), ((), ())),
                         preferred_element_type=jnp.float32)          # (TQ, Sp) f32

    # Relation term: q_rel[i, j] = qr[i, relation[i, j]] via a small where-based
    # one-hot combine over the (static, tiny) number of relation kinds.
    rel = rel_ref[...].astype(jnp.int32)                              # widen int8
    q_rel = jnp.zeros_like(qk)
    for r in range(num_rel):                                          # static unroll
        q_rel = q_rel + jnp.where(rel == r, qr_ref[:, r:r + 1], 0.0)

    # Exact masked_fill semantics: masked / padded positions become exactly -1e9.
    keep = mask_ref[...].astype(jnp.int32) != 0
    scores = jnp.where(keep, qk + q_rel, jnp.float32(-1e9))

    # Numerically stable softmax; per-row divide goes to the EUP.
    m = jnp.max(scores, axis=-1, keepdims=True)
    e = jnp.exp(scores - m)
    s = jnp.sum(e, axis=-1, keepdims=True)
    out_ref[...] = (e * pl.reciprocal(s, approx=True)).astype(out_ref.dtype)


def pointer_with_relations(query, key, value, relation, mask=None, *,
                           params, out_dtype=jnp.float32):
    """query/key/value: (B, S, H); relation: (S, S) int; mask: (S, S) int.

    Returns the module's self.attn[0, 0], shape (S, S).
    """
    del value  # value / relation_v / dropout never reach p_attn_orig[0, 0]
    _, S, H = query.shape
    num_rel = params["rel_k_emb"].shape[0]
    if mask is None:
        mask = jnp.ones((S, S), jnp.int32)

    TQ = 128
    Sp = _round_up(S, TQ)
    Hp = _round_up(H, 128)
    NRP = 128  # lane-padded relation-kind axis for the (small) qr stream

    f32 = jnp.float32
    inv_sqrt_dk = f32(1.0 / math.sqrt(H))

    # Hoisted one-time projections (plain XLA matmuls), batch 0 only.
    q = (query[0].astype(f32) @ params["wq"] + params["bq"]) * inv_sqrt_dk  # (S, H)
    k = key[0].astype(f32) @ params["wk"] + params["bk"]                    # (S, H)
    qr = q @ params["rel_k_emb"].T                                          # (S, num_rel)

    # bf16 matmul operands (f32 accumulation happens on the MXU in-kernel);
    # int8 for the two (S, S)-sized side streams.
    q_p = _pad2d(q.astype(jnp.bfloat16), Sp, Hp)
    k_p = _pad2d(k.astype(jnp.bfloat16), Sp, Hp)
    qr_p = _pad2d(qr.astype(f32), Sp, NRP)
    rel_p = _pad2d(relation.astype(jnp.int8), Sp, Sp)          # pad value irrelevant (masked)
    mask_p = _pad2d((mask != 0).astype(jnp.int8), Sp, Sp)      # padded keys/rows -> masked

    kernel = functools.partial(_scores_softmax_kernel, num_rel=num_rel)

    attn = pl.pallas_call(
        kernel,
        out_shape=jax.ShapeDtypeStruct((Sp, Sp), out_dtype),
        grid=(Sp // TQ,),
        in_specs=[
            pl.BlockSpec((TQ, Hp), lambda i: (i, 0)),    # q tile (bf16)
            pl.BlockSpec((Sp, Hp), lambda i: (0, 0)),    # full k, resident (bf16)
            pl.BlockSpec((TQ, NRP), lambda i: (i, 0)),   # qr tile (f32)
            pl.BlockSpec((TQ, Sp), lambda i: (i, 0)),    # relation ids (int8)
            pl.BlockSpec((TQ, Sp), lambda i: (i, 0)),    # mask (int8)
        ],
        out_specs=pl.BlockSpec((TQ, Sp), lambda i: (i, 0)),
        compiler_params=pltpu.CompilerParams(
            dimension_semantics=("parallel",),
            vmem_limit_bytes=_vmem_limit_bytes()),
    )(q_p, k_p, qr_p, rel_p, mask_p)

    return attn[:S, :S]  # == torch's self.attn[0, 0]


def _reference(query, key, relation, mask, params):
    """Plain-JAX mirror of the PyTorch math (correctness check)."""
    H = query.shape[-1]
    rel_k = params["rel_k_emb"][relation]                 # (S, S, H)
    q = query @ params["wq"] + params["bq"]
    k = key @ params["wk"] + params["bk"]
    qk = jnp.einsum("bqh,bkh->bqk", q, k)
    q_rel = jnp.einsum("bqh,qkh->bqk", q, rel_k)
    scores = (qk + q_rel) / math.sqrt(H)
    scores = jnp.where(mask[None] == 0, -1e9, scores)
    return jax.nn.softmax(scores, axis=-1)[0]


if __name__ == "__main__":
    B, S, H = 2, 8, 32
    num_relation_kinds = 5

    root = jax.random.PRNGKey(0)
    ks = jax.random.split(root, 10)

    params = {
        "wq": jax.random.normal(ks[0], (H, H), jnp.float32) * 0.05,
        "bq": jax.random.normal(ks[1], (H,), jnp.float32) * 0.05,
        "wk": jax.random.normal(ks[2], (H, H), jnp.float32) * 0.05,
        "bk": jax.random.normal(ks[3], (H,), jnp.float32) * 0.05,
        "rel_k_emb": jax.random.normal(ks[4], (num_relation_kinds, H), jnp.float32) * 0.05,
    }

    query = jax.random.normal(ks[5], (B, S, H), jnp.float32)
    key_ = jax.random.normal(ks[6], (B, S, H), jnp.float32)
    value = jax.random.normal(ks[7], (B, S, H), jnp.float32)
    relation = jax.random.randint(ks[8], (S, S), 0, num_relation_kinds, jnp.int32)
    # Guarantee at least one unmasked entry per row (fully-masked rows are
    # degenerate for any attention formulation).
    mask = ((jax.random.uniform(ks[9], (S, S)) > 0.2)
            | jnp.eye(S, dtype=bool)).astype(jnp.int32)

    fn = jax.jit(pointer_with_relations)

    out = jax.block_until_ready(fn(query, key_, value, relation, mask, params=params))
    ref = _reference(query, key_, relation, mask, params)
    assert out.shape == (S, S)
    # Tolerance covers bf16 matmul operands + the approximate EUP reciprocal.
    assert jnp.allclose(out, ref, atol=5e-3, rtol=5e-3), "mismatch vs reference (S=8)"

    # Second small check: exercises padding (S not a multiple of 128) and a
    # multi-tile grid (Sp=256 -> 2 query tiles).
    S2 = 200
    ks2 = jax.random.split(jax.random.PRNGKey(1), 5)
    query2 = jax.random.normal(ks2[0], (B, S2, H), jnp.float32)
    key2 = jax.random.normal(ks2[1], (B, S2, H), jnp.float32)
    value2 = jax.random.normal(ks2[2], (B, S2, H), jnp.float32)
    relation2 = jax.random.randint(ks2[3], (S2, S2), 0, num_relation_kinds, jnp.int32)
    mask2 = ((jax.random.uniform(ks2[4], (S2, S2)) > 0.2)
             | jnp.eye(S2, dtype=bool)).astype(jnp.int32)
    out2 = jax.block_until_ready(fn(query2, key2, value2, relation2, mask2, params=params))
    ref2 = _reference(query2, key2, relation2, mask2, params)
    assert out2.shape == (S2, S2)
    assert jnp.allclose(out2, ref2, atol=5e-3, rtol=5e-3), "mismatch vs reference (S=200)"

    print("KERNEL_OK")
</pallas_src>

<mosaic_0001>
module attributes {stable_mosaic.version = 11 : i64} {
  func.func @_scores_softmax_kernel(%arg0: i32, %arg1: memref<128x128xbf16, #tpu.memory_space<vmem>>, %arg2: memref<128x128xbf16, #tpu.memory_space<vmem>>, %arg3: memref<128x128xf32, #tpu.memory_space<vmem>>, %arg4: memref<128x128xi8, #tpu.memory_space<vmem>>, %arg5: memref<128x128xi8, #tpu.memory_space<vmem>>, %arg6: memref<128x128xf32, #tpu.memory_space<vmem>>) attributes {dimension_semantics = [#tpu.dimension_semantics<parallel>], iteration_bounds = array<i64: 1>, scalar_prefetch = 0 : i64, scratch_operands = 0 : i64, tpu.core_type = #tpu.core_type<tc>, window_params = [{transform_indices = @transform_0, window_bounds = array<i64: 128, 128>}, {pipeline_mode = #tpu.pipeline_mode<synchronous>, transform_indices = @transform_1, window_bounds = array<i64: 128, 128>}, {transform_indices = @transform_2, window_bounds = array<i64: 128, 128>}, {transform_indices = @transform_3, window_bounds = array<i64: 128, 128>}, {transform_indices = @transform_4, window_bounds = array<i64: 128, 128>}, {transform_indices = @transform_5, window_bounds = array<i64: 128, 128>}]} {
    %c0 = arith.constant 0 : index
    %c0_0 = arith.constant 0 : index
    %0 = vector.load %arg1[%c0, %c0_0] : memref<128x128xbf16, #tpu.memory_space<vmem>>, vector<128x128xbf16>
    %c0_1 = arith.constant 0 : index
    %c0_2 = arith.constant 0 : index
    %1 = vector.load %arg2[%c0_1, %c0_2] : memref<128x128xbf16, #tpu.memory_space<vmem>>, vector<128x128xbf16>
    %cst = arith.constant dense<0.000000e+00> : vector<128x128xf32>
    %2 = tpu.matmul %0, %1, %cst {dimension_numbers = #tpu.dot_dimension_numbers<[1], [1], [0], [0], [0, 0, 1, 0], [], []>} : vector<128x128xbf16>, vector<128x128xbf16>, vector<128x128xf32> -> vector<128x128xf32>
    %c0_3 = arith.constant 0 : index
    %c0_4 = arith.constant 0 : index
    %3 = vector.load %arg4[%c0_3, %c0_4] : memref<128x128xi8, #tpu.memory_space<vmem>>, vector<128x128xi8>
    %4 = arith.extsi %3 : vector<128x128xi8> to vector<128x128xi32>
    %cst_5 = arith.constant 0.000000e+00 : f32
    %5 = vector.broadcast %cst_5 : f32 to vector<128x128xf32>
    %c0_i32 = arith.constant 0 : i32
    %6 = vector.broadcast %c0_i32 : i32 to vector<128x128xi32>
    %7 = arith.cmpi eq, %4, %6 : vector<128x128xi32>
    %c0_6 = arith.constant 0 : index
    %c0_7 = arith.constant 0 : index
    %8 = vector.load %arg3[%c0_6, %c0_7] : memref<128x128xf32, #tpu.memory_space<vmem>>, vector<128x1xf32>
    %cst_8 = arith.constant 0.000000e+00 : f32
    %9 = vector.shape_cast %8 : vector<128x1xf32> to vector<128x1xf32>
    %10 = vector.broadcast %9 : vector<128x1xf32> to vector<128x128xf32>
    %11 = vector.broadcast %cst_8 : f32 to vector<128x128xf32>
    %12 = arith.select %7, %10, %11 : vector<128x128xi1>, vector<128x128xf32>
    %13 = arith.addf %5, %12 : vector<128x128xf32>
    %c1_i32 = arith.constant 1 : i32
    %14 = vector.broadcast %c1_i32 : i32 to vector<128x128xi32>
    %15 = arith.cmpi eq, %4, %14 : vector<128x128xi32>
    %c0_9 = arith.constant 0 : index
    %c1 = arith.constant 1 : index
    %16 = vector.load %arg3[%c0_9, %c1] : memref<128x128xf32, #tpu.memory_space<vmem>>, vector<128x1xf32>
    %cst_10 = arith.constant 0.000000e+00 : f32
    %17 = vector.shape_cast %16 : vector<128x1xf32> to vector<128x1xf32>
    %18 = vector.broadcast %17 : vector<128x1xf32> to vector<128x128xf32>
    %19 = vector.broadcast %cst_10 : f32 to vector<128x128xf32>
    %20 = arith.select %15, %18, %19 : vector<128x128xi1>, vector<128x128xf32>
    %21 = arith.addf %13, %20 : vector<128x128xf32>
    %c2_i32 = arith.constant 2 : i32
    %22 = vector.broadcast %c2_i32 : i32 to vector<128x128xi32>
    %23 = arith.cmpi eq, %4, %22 : vector<128x128xi32>
    %c0_11 = arith.constant 0 : index
    %c2 = arith.constant 2 : index
    %24 = vector.load %arg3[%c0_11, %c2] : memref<128x128xf32, #tpu.memory_space<vmem>>, vector<128x1xf32>
    %cst_12 = arith.constant 0.000000e+00 : f32
    %25 = vector.shape_cast %24 : vector<128x1xf32> to vector<128x1xf32>
    %26 = vector.broadcast %25 : vector<128x1xf32> to vector<128x128xf32>
    %27 = vector.broadcast %cst_12 : f32 to vector<128x128xf32>
    %28 = arith.select %23, %26, %27 : vector<128x128xi1>, vector<128x128xf32>
    %29 = arith.addf %21, %28 : vector<128x128xf32>
    %c3_i32 = arith.constant 3 : i32
    %30 = vector.broadcast %c3_i32 : i32 to vector<128x128xi32>
    %31 = arith.cmpi eq, %4, %30 : vector<128x128xi32>
    %c0_13 = arith.constant 0 : index
    %c3 = arith.constant 3 : index
    %32 = vector.load %arg3[%c0_13, %c3] : memref<128x128xf32, #tpu.memory_space<vmem>>, vector<128x1xf32>
    %cst_14 = arith.constant 0.000000e+00 : f32
    %33 = vector.shape_cast %32 : vector<128x1xf32> to vector<128x1xf32>
    %34 = vector.broadcast %33 : vector<128x1xf32> to vector<128x128xf32>
    %35 = vector.broadcast %cst_14 : f32 to vector<128x128xf32>
    %36 = arith.select %31, %34, %35 : vector<128x128xi1>, vector<128x128xf32>
    %37 = arith.addf %29, %36 : vector<128x128xf32>
    %c4_i32 = arith.constant 4 : i32
    %38 = vector.broadcast %c4_i32 : i32 to vector<128x128xi32>
    %39 = arith.cmpi eq, %4, %38 : vector<128x128xi32>
    %c0_15 = arith.constant 0 : index
    %c4 = arith.constant 4 : index
    %40 = vector.load %arg3[%c0_15, %c4] : memref<128x128xf32, #tpu.memory_space<vmem>>, vector<128x1xf32>
    %cst_16 = arith.constant 0.000000e+00 : f32
    %41 = vector.shape_cast %40 : vector<128x1xf32> to vector<128x1xf32>
    %42 = vector.broadcast %41 : vector<128x1xf32> to vector<128x128xf32>
    %43 = vector.broadcast %cst_16 : f32 to vector<128x128xf32>
    %44 = arith.select %39, %42, %43 : vector<128x128xi1>, vector<128x128xf32>
    %45 = arith.addf %37, %44 : vector<128x128xf32>
    %c0_17 = arith.constant 0 : index
    %c0_18 = arith.constant 0 : index
    %46 = vector.load %arg5[%c0_17, %c0_18] : memref<128x128xi8, #tpu.memory_space<vmem>>, vector<128x128xi8>
    %47 = arith.extsi %46 : vector<128x128xi8> to vector<128x128xi32>
    %c0_i32_19 = arith.constant 0 : i32
    %48 = vector.broadcast %c0_i32_19 : i32 to vector<128x128xi32>
    %49 = arith.cmpi ne, %47, %48 : vector<128x128xi32>
    %50 = arith.addf %2, %45 : vector<128x128xf32>
    %cst_20 = arith.constant -1.000000e+09 : f32
    %51 = vector.broadcast %cst_20 : f32 to vector<128x128xf32>
    %52 = arith.select %49, %50, %51 : vector<128x128xi1>, vector<128x128xf32>
    %cst_21 = arith.constant dense<0xFF800000> : vector<128xf32>
    %53 = vector.multi_reduction <maximumf>, %52, %cst_21 [1] : vector<128x128xf32> to vector<128xf32>
    %54 = vector.shape_cast %53 : vector<128xf32> to vector<128x1xf32>
    %55 = vector.broadcast %54 : vector<128x1xf32> to vector<128x128xf32>
    %56 = arith.subf %52, %55 : vector<128x128xf32>
    %57 = math.exp %56 : vector<128x128xf32>
    %cst_22 = arith.constant dense<0.000000e+00> : vector<128xf32>
    %58 = vector.multi_reduction <add>, %57, %cst_22 [1] : vector<128x128xf32> to vector<128xf32>
    %59 = vector.shape_cast %58 : vector<128xf32> to vector<128x1xf32>
    %60 = tpu.reciprocal %59 {approx = true} : vector<128x1xf32> -> vector<128x1xf32>
    %61 = vector.broadcast %60 : vector<128x1xf32> to vector<128x128xf32>
    %62 = arith.mulf %57, %61 : vector<128x128xf32>
    %c0_23 = arith.constant 0 : index
    %c0_24 = arith.constant 0 : index
    %63 = vector.load %arg6[%c0_23, %c0_24] : memref<128x128xf32, #tpu.memory_space<vmem>>, vector<128x128xf32>
    tpu.vector_store %arg6[%c0_23, %c0_24], %62 {strides = array<i32>} : memref<128x128xf32, #tpu.memory_space<vmem>>, vector<128x128xf32>,
    return
  }
  func.func @transform_0(%arg0: i32) -> (i32, i32) {
    %c0_i32 = arith.constant 0 : i32
    %c0_i32_0 = arith.constant 0 : i32
    return %arg0, %c0_i32 : i32, i32
  }
  func.func @transform_1(%arg0: i32) -> (i32, i32) {
    %c0_i32 = arith.constant 0 : i32
    %c0_i32_0 = arith.constant 0 : i32
    %c0_i32_1 = arith.constant 0 : i32
    return %c0_i32, %c0_i32_0 : i32, i32
  }
  func.func @transform_2(%arg0: i32) -> (i32, i32) {
    %c0_i32 = arith.constant 0 : i32
    %c0_i32_0 = arith.constant 0 : i32
    return %arg0, %c0_i32 : i32, i32
  }
  func.func @transform_3(%arg0: i32) -> (i32, i32) {
    %c0_i32 = arith.constant 0 : i32
    %c0_i32_0 = arith.constant 0 : i32
    return %arg0, %c0_i32 : i32, i32
  }
  func.func @transform_4(%arg0: i32) -> (i32, i32) {
    %c0_i32 = arith.constant 0 : i32
    %c0_i32_0 = arith.constant 0 : i32
    return %arg0, %c0_i32 : i32, i32
  }
  func.func @transform_5(%arg0: i32) -> (i32, i32) {
    %c0_i32 = arith.constant 0 : i32
    %c0_i32_0 = arith.constant 0 : i32
    return %arg0, %c0_i32 : i32, i32
  }
}

</mosaic_0001>

<bundles_post_ra>
// kernel: pointer_with_relations.1
= control target key start
LH: loop header
LB: loop body
LE: loop exit
PB: predicated region body
PF: predicated region fallthrough
CT: control target
= control target key end

     0   :  { %v1249_v0 = vmov 0   ;;  %v1250_v24 = vmov 1   ;;  %v1251_v32 = vmov 2   ;;  %v1252_v35 = vmov 3   ;;  %s2104_s2 = inlined_call_operand.vmem [shape: f32[128,128], index: 2, kind: input, shape index: {}]   ;;  %s2105_s1 = inlined_call_operand.vmem [shape: bf16[128,128], index: 1, kind: input, shape index: {}]   ;;  %s2106_s0 = inlined_call_operand.vmem [shape: bf16[128,128], index: 0, kind: input, shape index: {}]   ;;  %s2107_s3 = inlined_call_operand.vmem [shape: s8[128,128], index: 3, kind: input, shape index: {}]   ;;  %s2108_s4 = inlined_call_operand.vmem [shape: s8[128,128], index: 4, kind: input, shape index: {}]   ;;  %s2109_s5 = inlined_call_operand.vmem [shape: f32[128,128], index: 5, kind: output, shape index: {}]  }
   0x1   :  { %1160 = vset.pattern.permute.xlu1 %v1249_v0  ;;  %1159 = vset.pattern.permute.xlu0 %v1249_v0  ;;  %v1287_v1 = vld [vmem:[%s2104_s2 + $0x10] sm:$0xff]  ;;  %v1292_v2 = vld [vmem:[%s2104_s2] sm:$0xff]  ;;  %v1169_v3 = vld [vmem:[%s2105_s1 + $0x38] sm:$0xff]   ;;  %v1253_v39 = vmov 4  }
   0x2   :  { %117 = vperm.xlu1 %1160, %v1287_v1   ;;  %107 = vperm.xlu0 %1159, %v1292_v2   ;;  %v1302_v4 = vld [vmem:[%s2104_s2 + $0x18] sm:$0xff]  ;;  %v1307_v5 = vld [vmem:[%s2104_s2 + $0x8] sm:$0xff]  ;;  %v1170_v6 = vld [vmem:[%s2105_s1 + $0x30] sm:$0xff]  }
   0x3   :  { %1106 = vmatprep.subr.bf16.mxu0 %v1169_v3  ;;  %1138 = vmatprep.subr.bf16.mxu1 %v1169_v3  ;;  %v1317_v7 = vld [vmem:[%s2104_s2 + $0x28] sm:$0xff]  ;;  %v1322_v8 = vld [vmem:[%s2104_s2 + $0x20] sm:$0xff]  ;;  %v1327_v9 = vld [vmem:[%s2104_s2 + $0x38] sm:$0xff] }
   0x4   :  { %1107 = vmatpush3.bf16.xpose.msra.mxu0 %v1169_v3  ;;  %1146 = vmatpush3.bf16.xpose.msra.mxu1 %v1169_v3  ;;  %v1334_v10 = vld [vmem:[%s2104_s2 + $0x30] sm:$0xff]  ;;  %v1171_v11 = vld [vmem:[%s2105_s1 + $0x28] sm:$0xff]   ;;  %v1349_v13 = vld [vmem:[%s2104_s2 + $0x40] sm:$0xff] }
   0x5   :  { %1108 = vmatprep.subr.bf16.mxu0 %v1170_v6  ;;  %1139 = vmatprep.subr.bf16.mxu1 %v1170_v6  ;;  %v1342_v12 = vld [vmem:[%s2104_s2 + $0x48] sm:$0xff]  ;;  %v1177_v14 = vld [vmem:[%s2106_s0] sm:$0xff]   ;;  %v1357_v15 = vld [vmem:[%s2104_s2 + $0x58] sm:$0xff] }
   0x6   :  { %122 = vperm.xlu1 %1160, %v1302_v4   ;;  %112 = vperm.xlu0 %1159, %v1307_v5   ;;  %v1179_v16 = vld [vmem:[%s2106_s0 + $0x20] sm:$0xff]   ;;  %v1367_v17 = vld [vmem:[%s2104_s2 + $0x50] sm:$0xff]  ;;  %v1377_v19 = vld [vmem:[%s2104_s2 + $0x68] sm:$0xff] }
   0x7   :  { %1122 = vmatprep.mubr.bf16.mxu0 %v1177_v14  ;;  %v1172_v18 = vld [vmem:[%s2105_s1 + $0x20] sm:$0xff]   ;;  %1130 = vmatprep.mubr.bf16.mxu1 %v1179_v16  ;;  %v1389_v21 = vld [vmem:[%s2104_s2 + $0x78] sm:$0xff]  ;;  %v1394_v22 = vld [vmem:[%s2104_s2 + $0x70] sm:$0xff] }
   0x8   :  { %v1382_v20 = vld [vmem:[%s2104_s2 + $0x60] sm:$0xff]  ;;  %v1173_v23 = vld [vmem:[%s2105_s1 + $0x18] sm:$0xff]   ;;  %v1174_v25 = vld [vmem:[%s2105_s1 + $0x10] sm:$0xff]  }
   0x9   :  { %v1175_v26 = vld [vmem:[%s2105_s1 + $0x8] sm:$0xff]   ;;  %v1176_v27 = vld [vmem:[%s2105_s1] sm:$0xff]   ;;  %v1181_v30 = vld [vmem:[%s2106_s0 + $0x10] sm:$0xff]  }
   0xa   :  { %132 = vperm.xlu1 %1160, %v1317_v7   ;;  %127 = vperm.xlu0 %1159, %v1322_v8   ;;  %v1178_v28 = vld [vmem:[%s2106_s0 + $0x8] sm:$0xff]   ;;  %v1183_v31 = vld [vmem:[%s2106_s0 + $0x30] sm:$0xff]   ;;  %v1182_v33 = vld [vmem:[%s2106_s0 + $0x18] sm:$0xff]  }
   0xb   :  { %v1180_v29 = vld [vmem:[%s2106_s0 + $0x28] sm:$0xff]   ;;  %v1184_v34 = vld [vmem:[%s2106_s0 + $0x38] sm:$0xff]  }
   0xc   :  { %1109 = vmatpush3.bf16.xpose.msra.mxu0 %v1170_v6  ;;  %1147 = vmatpush3.bf16.xpose.msra.mxu1 %v1170_v6  ;;  %v1533_v61 = vld [vmem:[%s2107_s3 + $0x18] sm:$0xff] }
   0xd   :  { %1110 = vmatprep.subr.bf16.mxu0 %v1171_v11  ;;  %1140 = vmatprep.subr.bf16.mxu1 %v1171_v11  ;;  %v1540_v0 = vunpack.c.0.s8 %v1533_v61  ;;  %v1548_v3 = vunpack.c.2.s8 %v1533_v61 }
   0xe   :  { %142 = vperm.xlu1 %1160, %v1327_v9   ;;  %137 = vperm.xlu0 %1159, %v1334_v10  }
   0xf   :  { %vm85_vm0 = vcmp.eq.s32.totalorder %v1540_v0, 0  ;;  %vm229_vm1 = vcmp.eq.s32.totalorder %v1540_v0, 1  ;;  %vm87_vm2 = vcmp.eq.s32.totalorder %v1548_v3, 0  ;;  %vm231_vm3 = vcmp.eq.s32.totalorder %v1548_v3, 1 }
  0x12   :  { %152 = vperm.xlu1 %1160, %v1342_v12   ;;  %147 = vperm.xlu0 %1159, %v1349_v13  }
  0x14   :  { %1111 = vmatpush3.bf16.xpose.msra.mxu0 %v1171_v11  ;;  %1148 = vmatpush3.bf16.xpose.msra.mxu1 %v1171_v11 }
  0x15   :  { %1112 = vmatprep.subr.bf16.mxu0 %v1172_v18  ;;  %1141 = vmatprep.subr.bf16.mxu1 %v1172_v18 }
  0x16   :  { %162 = vperm.xlu1 %1160, %v1357_v15   ;;  %157 = vperm.xlu0 %1159, %v1367_v17  }
  0x1a   :  { %172 = vperm.xlu1 %1160, %v1377_v19   ;;  %167 = vperm.xlu0 %1159, %v1382_v20  }
  0x1c   :  { %1113 = vmatpush3.bf16.xpose.msra.mxu0 %v1172_v18  ;;  %1149 = vmatpush3.bf16.xpose.msra.mxu1 %v1172_v18 }
  0x1d   :  { %1114 = vmatprep.subr.bf16.mxu0 %v1173_v23  ;;  %1142 = vmatprep.subr.bf16.mxu1 %v1173_v23 }
  0x1e   :  { %182 = vperm.xlu1 %1160, %v1389_v21   ;;  %177 = vperm.xlu0 %1159, %v1394_v22  }
  0x22   :  { %1162 = vset.pattern.permute.xlu1 %v1250_v24  ;;  %1161 = vset.pattern.permute.xlu0 %v1250_v24 }
  0x23   :  { %238 = vperm.xlu1 %1162, %v1307_v5   ;;  %234 = vperm.xlu0 %1161, %v1292_v2  }
  0x24   :  { %1115 = vmatpush3.bf16.xpose.msra.mxu0 %v1173_v23  ;;  %1150 = vmatpush3.bf16.xpose.msra.mxu1 %v1173_v23 }
  0x25   :  { %1116 = vmatprep.subr.bf16.mxu0 %v1174_v25  ;;  %1143 = vmatprep.subr.bf16.mxu1 %v1174_v25 }
  0x27   :  { %242 = vperm.xlu1 %1162, %v1287_v1   ;;  %246 = vperm.xlu0 %1161, %v1302_v4  }
  0x2b   :  { %250 = vperm.xlu1 %1162, %v1322_v8   ;;  %254 = vperm.xlu0 %1161, %v1317_v7  }
  0x2c   :  { %1117 = vmatpush3.bf16.xpose.msra.mxu0 %v1174_v25  ;;  %1151 = vmatpush3.bf16.xpose.msra.mxu1 %v1174_v25 }
  0x2d   :  { %1118 = vmatprep.subr.bf16.mxu0 %v1175_v26  ;;  %1144 = vmatprep.subr.bf16.mxu1 %v1175_v26 }
  0x2f   :  { %258 = vperm.xlu1 %1162, %v1334_v10   ;;  %262 = vperm.xlu0 %1161, %v1327_v9  }
  0x33   :  { %266 = vperm.xlu1 %1162, %v1349_v13   ;;  %270 = vperm.xlu0 %1161, %v1342_v12  }
  0x34   :  { %1119 = vmatpush3.bf16.xpose.msra.mxu0 %v1175_v26  ;;  %1152 = vmatpush3.bf16.xpose.msra.mxu1 %v1175_v26 }
  0x35   :  { %1120 = vmatprep.subr.bf16.mxu0 %v1176_v27  ;;  %1145 = vmatprep.subr.bf16.mxu1 %v1176_v27 }
  0x37   :  { %274 = vperm.xlu1 %1162, %v1367_v17   ;;  %278 = vperm.xlu0 %1161, %v1357_v15  }
  0x3b   :  { %282 = vperm.xlu1 %1162, %v1382_v20   ;;  %286 = vperm.xlu0 %1161, %v1377_v19  }
  0x3c   :  { %1121 = vmatpush3.bf16.xpose.msra.mxu0 %v1176_v27  ;;  %1153 = vmatpush3.bf16.xpose.msra.mxu1 %v1176_v27 }
  0x3f   :  { %290 = vperm.xlu1 %1162, %v1394_v22   ;;  %294 = vperm.xlu0 %1161, %v1389_v21  }
  0x43   :  { %1163 = vset.pattern.permute.xlu1 %v1251_v32  ;;  %1164 = vset.pattern.permute.xlu0 %v1251_v32 }
  0x44   :  { %346 = vperm.xlu1 %1163, %v1292_v2   ;;  %350 = vperm.xlu0 %1164, %v1307_v5  }
  0x45   :  { %1123 = vmatmul.mubr.bf16.vlgmr.msra.gmra.mxu0 %v1178_v28  ;;  %1131 = vmatmul.mubr.bf16.vlgmr.msra.gmra.mxu1 %v1180_v29 }
  0x46   :  { %1126 = vmatprep.mubr.bf16.mxu0 %v1181_v30  ;;  %1134 = vmatprep.mubr.bf16.mxu1 %v1183_v31 }
  0x48   :  { %354 = vperm.xlu1 %1163, %v1287_v1   ;;  %362 = vperm.xlu0 %1164, %v1322_v8  }
  0x4c   :  { %358 = vperm.xlu1 %1163, %v1302_v4   ;;  %370 = vperm.xlu0 %1164, %v1334_v10  }
  0x4d   :  { %1127 = vmatmul.mubr.bf16.gmra.mxu0 %v1182_v33  ;;  %1135 = vmatmul.mubr.bf16.gmra.mxu1 %v1184_v34 }
  0x50   :  { %366 = vperm.xlu1 %1163, %v1317_v7   ;;  %378 = vperm.xlu0 %1164, %v1349_v13  }
  0x54   :  { %374 = vperm.xlu1 %1163, %v1327_v9   ;;  %386 = vperm.xlu0 %1164, %v1367_v17  }
  0x58   :  { %382 = vperm.xlu1 %1163, %v1342_v12   ;;  %394 = vperm.xlu0 %1164, %v1382_v20  }
  0x5c   :  { %390 = vperm.xlu1 %1163, %v1357_v15   ;;  %402 = vperm.xlu0 %1164, %v1394_v22  }
  0x60   :  { %398 = vperm.xlu1 %1163, %v1377_v19   ;;  %1165 = vset.pattern.permute.xlu0 %v1252_v35 }
  0x61   :  { %458 = vperm.xlu0 %1165, %v1292_v2  }
  0x64   :  { %406 = vperm.xlu1 %1163, %v1389_v21  }
  0x65   :  { %470 = vperm.xlu0 %1165, %v1302_v4  }
  0x68   :  { %1166 = vset.pattern.permute.xlu1 %v1252_v35 }
  0x69   :  { %462 = vperm.xlu1 %1166, %v1307_v5   ;;  %478 = vperm.xlu0 %1165, %v1317_v7  }
  0x6d   :  { %466 = vperm.xlu1 %1166, %v1287_v1   ;;  %486 = vperm.xlu0 %1165, %v1327_v9  }
  0x71   :  { %474 = vperm.xlu1 %1166, %v1322_v8   ;;  %494 = vperm.xlu0 %1165, %v1342_v12  }
  0x75   :  { %482 = vperm.xlu1 %1166, %v1334_v10   ;;  %502 = vperm.xlu0 %1165, %v1357_v15  }
  0x79   :  { %490 = vperm.xlu1 %1166, %v1349_v13   ;;  %510 = vperm.xlu0 %1165, %v1377_v19  }
  0x7d   :  { %v1472_v36 = vpop.permute.xlu1 %117  ;;  %498 = vperm.xlu1 %1166, %v1367_v17   ;;  %518 = vperm.xlu0 %1165, %v1389_v21   ;;  %v1476_v37 = vpop.permute.xlu0 %107 }
  0x81   :  { %v1478_v38 = vpop.permute.xlu1 %122  ;;  %506 = vperm.xlu1 %1166, %v1382_v20   ;;  %1168 = vset.pattern.permute.xlu0 %v1253_v39  ;;  %v1481_v40 = vpop.permute.xlu0 %112 }
  0x82   :  { %574 = vperm.xlu0 %1168, %v1307_v5  }
  0x85   :  { %v1484_v41 = vpop.permute.xlu1 %132  ;;  %514 = vperm.xlu1 %1166, %v1394_v22   ;;  %v1487_v42 = vpop.permute.xlu0 %127 }
  0x86   :  { %586 = vperm.xlu0 %1168, %v1322_v8  }
  0x89   :  { %v1490_v43 = vpop.permute.xlu1 %142  ;;  %1167 = vset.pattern.permute.xlu1 %v1253_v39  ;;  %v1492_v44 = vpop.permute.xlu0 %137 }
  0x8a   :  { %570 = vperm.xlu1 %1167, %v1292_v2   ;;  %594 = vperm.xlu0 %1168, %v1334_v10  }
  0x8d   :  { %v1496_v45 = vpop.permute.xlu1 %152  ;;  %v1498_v46 = vpop.permute.xlu0 %147 }
  0x8e   :  { %578 = vperm.xlu1 %1167, %v1287_v1   ;;  %602 = vperm.xlu0 %1168, %v1349_v13  }
  0x91   :  { %v1502_v47 = vpop.permute.xlu1 %162  ;;  %v1504_v48 = vpop.permute.xlu0 %157 }
  0x92   :  { %582 = vperm.xlu1 %1167, %v1302_v4   ;;  %610 = vperm.xlu0 %1168, %v1367_v17   ;;  %v53_v4 = vld [vmem:[%s2107_s3] sm:$0xff] }
  0x93   :  { %v1558_v8 = vunpack.c.1.s8 %v53_v4  ;;  %v1569_v14 = vunpack.c.3.s8 %v53_v4 }
  0x95   :  { %v1508_v49 = vpop.permute.xlu1 %172  ;;  %v168_v50 = vpop.permute.xlu0 %167  ;;  %vm218_vm4 = vcmp.eq.s32.totalorder %v1558_v8, 1  ;;  %vm74_vm7 = vcmp.eq.s32.totalorder %v1558_v8, 0  ;;  %vm330_vm12 = vcmp.eq.s32.totalorder %v1558_v8, 2  ;;  %vm220_vm14 = vcmp.eq.s32.totalorder %v1569_v14, 1 }
  0x96   :  { %590 = vperm.xlu1 %1167, %v1317_v7   ;;  %618 = vperm.xlu0 %1168, %v1382_v20   ;;  %v1556_v7 = vunpack.c.0.s8 %v53_v4  ;;  %v197_v10 = vsel %vm85_vm0, %v168_v50, 0.0  ;;  %v186_v28 = vsel %vm74_vm7, %v1481_v40, 0.0 }
  0x98   :  { %vm217_vm5 = vcmp.eq.s32.totalorder %v1556_v7, 1  ;;  %vm73_vm6 = vcmp.eq.s32.totalorder %v1556_v7, 0  ;;  %vm329_vm11 = vcmp.eq.s32.totalorder %v1556_v7, 2 }
  0x99   :  { %v1512_v51 = vpop.permute.xlu1 %182  ;;  %v178_v52 = vpop.permute.xlu0 %177  ;;  %v185_v27 = vsel %vm73_vm6, %v1476_v37, 0.0  ;;  %vm332_vm6 = vcmp.eq.s32.totalorder %v1569_v14, 2 }
  0x9a   :  { %598 = vperm.xlu1 %1167, %v1327_v9   ;;  %626 = vperm.xlu0 %1168, %v1394_v22   ;;  %v54_v9 = vld [vmem:[%s2107_s3 + $0x8] sm:$0xff]  ;;  %v199_v22 = vsel %vm87_vm2, %v178_v52, 0.0  ;;  %vm76_vm2 = vcmp.eq.s32.totalorder %v1569_v14, 0 }
  0x9b   :  { %v1575_v16 = vunpack.c.0.s8 %v54_v9  ;;  %v1577_v17 = vunpack.c.3.s8 %v54_v9  ;;  %v1579_v18 = vunpack.c.2.s8 %v54_v9 }
  0x9d   :  { %vm221_vm10 = vcmp.eq.s32.totalorder %v1575_v16, 1  ;;  %vm77_vm13 = vcmp.eq.s32.totalorder %v1575_v16, 0  ;;  %vm223_vm15 = vcmp.eq.s32.totalorder %v1579_v18, 1  ;;  %vm335_vm7 = vcmp.eq.s32.totalorder %v1579_v18, 2 }
  0x9e   :  { %v239_v53 = vpop.permute.xlu1 %238  ;;  %606 = vperm.xlu1 %1167, %v1342_v12   ;;  %v235_v54 = vpop.permute.xlu0 %234  ;;  %v1563_v12 = vunpack.c.2.s8 %v53_v4 }
  0x9f   :  { %v298_v24 = vsel %vm218_vm4, %v239_v53, 0.0  ;;  %v297_v25 = vsel %vm217_vm5, %v235_v54, 0.0  ;;  %v189_v53 = vsel %vm77_vm13, %v1487_v42, 0.0  ;;  %vm80_vm13 = vcmp.eq.s32.totalorder %v1577_v17, 0 }
  0xa0   :  { %vm75_vm8 = vcmp.eq.s32.totalorder %v1563_v12, 0  ;;  %vm219_vm9 = vcmp.eq.s32.totalorder %v1563_v12, 1  ;;  %v314_v30 = vadd.f32 %v298_v24, %v186_v28  ;;  %v313_v31 = vadd.f32 %v297_v25, %v185_v27 }
  0xa1   :  { %vm331_vm0 = vcmp.eq.s32.totalorder %v1563_v12, 2  ;;  %v187_v52 = vsel %vm75_vm8, %v1472_v36, 0.0 }
  0xa2   :  { %v1517_v55 = vpop.permute.xlu1 %242  ;;  %614 = vperm.xlu1 %1167, %v1357_v15   ;;  %v1520_v56 = vpop.permute.xlu0 %246  ;;  %v1573_v15 = vunpack.c.1.s8 %v54_v9 }
  0xa3   :  { %v299_v34 = vsel %vm219_vm9, %v1517_v55, 0.0  ;;  %v300_v36 = vsel %vm220_vm14, %v1520_v56, 0.0 }
  0xa4   :  { %v315_v54 = vadd.f32 %v299_v34, %v187_v52  ;;  %vm222_vm4 = vcmp.eq.s32.totalorder %v1573_v15, 1  ;;  %vm78_vm8 = vcmp.eq.s32.totalorder %v1573_v15, 0 }
  0xa6   :  { %v251_v57 = vpop.permute.xlu1 %250  ;;  %622 = vperm.xlu1 %1167, %v1377_v19   ;;  %v1523_v58 = vpop.permute.xlu0 %254 }
  0xa7   :  { %v301_v35 = vsel %vm221_vm10, %v251_v57, 0.0  ;;  %vm224_vm10 = vcmp.eq.s32.totalorder %v1577_v17, 1  ;;  %v302_v25 = vsel %vm222_vm4, %v1523_v58, 0.0 }
  0xa8   :  { %v317_v55 = vadd.f32 %v301_v35, %v189_v53 }
  0xaa   :  { %v1525_v59 = vpop.permute.xlu1 %258  ;;  %630 = vperm.xlu1 %1167, %v1389_v21   ;;  %v1528_v60 = vpop.permute.xlu0 %262  ;;  %v1588_v21 = vld [vmem:[%s2107_s3 + $0x10] sm:$0xff] }
  0xab   :  { %v1601_v29 = vunpack.c.0.s8 %v1588_v21 }
  0xad   :  { %vm225_vm5 = vcmp.eq.s32.totalorder %v1601_v29, 1  ;;  %vm81_vm9 = vcmp.eq.s32.totalorder %v1601_v29, 0 }
  0xae   :  { %v1535_v62 = vpop.permute.xlu1 %266  ;;  %v1537_v63 = vpop.permute.xlu0 %270  ;;  %v193_v58 = vsel %vm81_vm9, %v1498_v46, 0.0  ;;  %v192_v46 = vsel %vm80_vm13, %v1490_v43, 0.0  ;;  %vm446_vm13 = vcmp.eq.s32.totalorder %v1573_v15, 3 }
  0xb2   :  { %v1542_v1 = vpop.permute.xlu1 %274  ;;  %v1544_v2 = vpop.permute.xlu0 %278 }
  0xb6   :  { %v283_v5 = vpop.permute.xlu1 %282  ;;  %v1554_v6 = vpop.permute.xlu0 %286 }
  0xb7   :  { %v309_v11 = vsel %vm229_vm1, %v283_v5, 0.0  ;;  %vm333_vm1 = vcmp.eq.s32.totalorder %v1575_v16, 2  ;;  %v303_v5 = vsel %vm223_vm15, %v1525_v59, 0.0  ;;  %vm336_vm15 = vcmp.eq.s32.totalorder %v1577_v17, 2 }
  0xb8   :  { %v1566_v13 = vadd.f32 %v309_v11, %v197_v10 }
  0xba   :  { %v291_v19 = vpop.permute.xlu1 %290  ;;  %v1581_v20 = vpop.permute.xlu0 %294 }
  0xbb   :  { %v311_v23 = vsel %vm231_vm3, %v291_v19, 0.0  ;;  %vm79_vm3 = vcmp.eq.s32.totalorder %v1579_v18, 0  ;;  %v188_v19 = vsel %vm76_vm2, %v1478_v38, 0.0  ;;  %v305_v38 = vsel %vm225_vm5, %v1535_v62, 0.0 }
  0xbc   :  { %v1591_v26 = vadd.f32 %v311_v23, %v199_v22  ;;  %v191_v56 = vsel %vm79_vm3, %v1492_v44, 0.0  ;;  %v316_v59 = vadd.f32 %v300_v36, %v188_v19  ;;  %v1661_v62 = vunpack.c.1.s8 %v1588_v21 }
  0xbd   :  { %v319_v22 = vadd.f32 %v303_v5, %v191_v56  ;;  %vm341_vm3 = vcmp.eq.s32.totalorder %v1540_v0, 2 }
  0xbe   :  { %vm226_vm14 = vcmp.eq.s32.totalorder %v1661_v62, 1  ;;  %vm338_vm2 = vcmp.eq.s32.totalorder %v1661_v62, 2 }
  0xbf   :  { %v347_v32 = vpop.permute.xlu1 %346  ;;  %v351_v33 = vpop.permute.xlu0 %350 }
  0xc0   :  { %v409_v39 = vsel %vm329_vm11, %v347_v32, 0.0  ;;  %v410_v37 = vsel %vm330_vm12, %v351_v33, 0.0  ;;  %vm334_vm11 = vcmp.eq.s32.totalorder %v1573_v15, 2  ;;  %vm337_vm12 = vcmp.eq.s32.totalorder %v1601_v29, 2 }
  0xc1   :  { %v1606_v50 = vadd.f32 %v409_v39, %v313_v31  ;;  %v1608_v40 = vadd.f32 %v410_v37, %v314_v30  ;;  %v190_v31 = vsel %vm78_vm8, %v1484_v41, 0.0  ;;  %v321_v33 = vadd.f32 %v305_v38, %v193_v58 }
  0xc2   :  { %v318_v32 = vadd.f32 %v302_v25, %v190_v31  ;;  %v304_v39 = vsel %vm224_vm10, %v1528_v60, 0.0  ;;  %v306_v60 = vsel %vm226_vm14, %v1537_v63, 0.0  ;;  %v1700_v25 = vunpack.c.3.s8 %v1533_v61 }
  0xc3   :  { %v355_v57 = vpop.permute.xlu1 %354  ;;  %v363_v4 = vpop.permute.xlu0 %362  ;;  %vm441_vm14 = vcmp.eq.s32.totalorder %v1556_v7, 3 }
  0xc4   :  { %v411_v9 = vsel %vm331_vm0, %v355_v57, 0.0  ;;  %v413_v42 = vsel %vm333_vm1, %v363_v4, 0.0  ;;  %vm82_vm0 = vcmp.eq.s32.totalorder %v1661_v62, 0  ;;  %vm232_vm9 = vcmp.eq.s32.totalorder %v1700_v25, 1 }
  0xc5   :  { %v1628_v10 = vadd.f32 %v411_v9, %v315_v54  ;;  %v1630_v11 = vadd.f32 %v413_v42, %v317_v55  ;;  %v1673_v54 = vunpack.c.3.s8 %v1588_v21  ;;  %v320_v55 = vadd.f32 %v304_v39, %v192_v46 }
  0xc6   :  { %v194_v43 = vsel %vm82_vm0, %v1496_v45, 0.0  ;;  %v1685_v9 = vunpack.c.1.s8 %v1533_v61 }
  0xc7   :  { %v359_v23 = vpop.permute.xlu1 %358  ;;  %v371_v24 = vpop.permute.xlu0 %370  ;;  %vm228_vm1 = vcmp.eq.s32.totalorder %v1673_v54, 1  ;;  %vm84_vm4 = vcmp.eq.s32.totalorder %v1673_v54, 0  ;;  %v322_v42 = vadd.f32 %v306_v60, %v194_v43 }
  0xc8   :  { %v412_v27 = vsel %vm332_vm6, %v359_v23, 0.0  ;;  %v415_v28 = vsel %vm335_vm7, %v371_v24, 0.0  ;;  %v308_v63 = vsel %vm228_vm1, %v1544_v2, 0.0  ;;  %vm230_vm5 = vcmp.eq.s32.totalorder %v1685_v9, 1 }
  0xc9   :  { %v1649_v30 = vadd.f32 %v412_v27, %v316_v59  ;;  %v1651_v44 = vadd.f32 %v415_v28, %v319_v22  ;;  %vm340_vm6 = vcmp.eq.s32.totalorder %v1673_v54, 2  ;;  %vm343_vm7 = vcmp.eq.s32.totalorder %v1548_v3, 2 }
  0xca   :  { %v196_v45 = vsel %vm84_vm4, %v1502_v47, 0.0  ;;  %vm86_vm8 = vcmp.eq.s32.totalorder %v1685_v9, 0  ;;  %v310_v28 = vsel %vm230_vm5, %v1554_v6, 0.0  ;;  %vm342_vm10 = vcmp.eq.s32.totalorder %v1685_v9, 2 }
  0xcb   :  { %v367_v34 = vpop.permute.xlu1 %366  ;;  %v379_v35 = vpop.permute.xlu0 %378  ;;  %v324_v2 = vadd.f32 %v308_v63, %v196_v45  ;;  %v198_v47 = vsel %vm86_vm8, %v1508_v49, 0.0  ;;  %vm444_vm4 = vcmp.eq.s32.totalorder %v1569_v14, 3  ;;  %vm442_vm5 = vcmp.eq.s32.totalorder %v1558_v8, 3 }
  0xcc   :  { %v414_v37 = vsel %vm334_vm11, %v367_v34, 0.0  ;;  %v417_v52 = vsel %vm337_vm12, %v379_v35, 0.0  ;;  %vm88_vm11 = vcmp.eq.s32.totalorder %v1700_v25, 0  ;;  %v326_v61 = vadd.f32 %v310_v28, %v198_v47 }
  0xcd   :  { %v430_v41 = vadd.f32 %v414_v37, %v318_v32  ;;  %v1667_v53 = vadd.f32 %v417_v52, %v321_v33  ;;  %v312_v34 = vsel %vm232_vm9, %v1581_v20, 0.0  ;;  %vm344_vm12 = vcmp.eq.s32.totalorder %v1700_v25, 2 }
  0xce   :  { %v200_v37 = vsel %vm88_vm11, %v1512_v51, 0.0  ;;  %v67_v28 = vunpack.c.2.s8 %v1588_v21  ;;  %vm561_vm9 = vcmp.eq.s32.totalorder %v1601_v29, 4 }
  0xcf   :  { %v375_v57 = vpop.permute.xlu1 %374  ;;  %v1675_v4 = vpop.permute.xlu0 %386 }
  0xd0   :  { %v416_v36 = vsel %vm336_vm15, %v375_v57, 0.0  ;;  %vm443_vm15 = vcmp.eq.s32.totalorder %v1563_v12, 3  ;;  %vm227_vm0 = vcmp.eq.s32.totalorder %v67_v28, 1  ;;  %vm83_vm1 = vcmp.eq.s32.totalorder %v67_v28, 0 }
  0xd1   :  { %v1679_v5 = vadd.f32 %v416_v36, %v320_v55  ;;  %v307_v21 = vsel %vm227_vm0, %v1542_v1, 0.0  ;;  %vm451_vm8 = vcmp.eq.s32.totalorder %v67_v28, 3  ;;  %v195_v1 = vsel %vm83_vm1, %v1504_v48, 0.0 }
  0xd2   :  { %vm563_vm11 = vcmp.eq.s32.totalorder %v67_v28, 4  ;;  %vm447_vm1 = vcmp.eq.s32.totalorder %v1579_v18, 3 }
  0xd3   :  { %v383_v19 = vpop.permute.xlu1 %382  ;;  %v395_v56 = vpop.permute.xlu0 %394 }
  0xd4   :  { %v418_v59 = vsel %vm338_vm2, %v383_v19, 0.0  ;;  %v421_v22 = vsel %vm341_vm3, %v395_v56, 0.0  ;;  %vm553_vm2 = vcmp.eq.s32.totalorder %v1556_v7, 4  ;;  %vm339_vm3 = vcmp.eq.s32.totalorder %v67_v28, 2  ;;  %v1760_v7 = vld [vmem:[%s2108_s4] sm:$0xff] }
  0xd5   :  { %v1690_v23 = vadd.f32 %v418_v59, %v322_v42  ;;  %v1693_v24 = vadd.f32 %v421_v22, %v1566_v13 }
  0xd7   :  { %v391_v38 = vpop.permute.xlu1 %390  ;;  %v403_v27 = vpop.permute.xlu0 %402 }
  0xd8   :  { %v420_v31 = vsel %vm340_vm6, %v391_v38, 0.0  ;;  %v423_v58 = vsel %vm343_vm7, %v403_v27, 0.0  ;;  %vm449_vm6 = vcmp.eq.s32.totalorder %v1601_v29, 3  ;;  %vm555_vm7 = vcmp.eq.s32.totalorder %v1563_v12, 4 }
  0xd9   :  { %v1704_v13 = vadd.f32 %v420_v31, %v324_v2  ;;  %v1707_v32 = vadd.f32 %v423_v58, %v1591_v26  ;;  %v328_v26 = vadd.f32 %v312_v34, %v200_v37 }
  0xdb   :  { %v399_v33 = vpop.permute.xlu1 %398 }
  0xdc   :  { %v422_v6 = vsel %vm342_vm10, %v399_v33, 0.0  ;;  %v459_v35 = vpop.permute.xlu0 %458  ;;  %vm556_vm10 = vcmp.eq.s32.totalorder %v1569_v14, 4  ;;  %v1803_v14 = vld [vmem:[%s2108_s4 + $0x8] sm:$0xff] }
  0xdd   :  { %v1713_v39 = vadd.f32 %v422_v6, %v326_v61  ;;  %v521_v47 = vsel %vm441_vm14, %v459_v35, 0.0  ;;  %v671_v6 = vunpack.c.2.s8 %v1760_v7  ;;  %v419_v35 = vsel %vm339_vm3, %v1675_v4, 0.0 }
  0xde   :  { %v537_v37 = vadd.f32 %v521_v47, %v1606_v50  ;;  %vm448_vm3 = vcmp.eq.s32.totalorder %v1577_v17, 3 }
  0xdf   :  { %v407_v52 = vpop.permute.xlu1 %406 }
  0xe0   :  { %v424_v46 = vsel %vm344_vm12, %v407_v52, 0.0  ;;  %v471_v55 = vpop.permute.xlu0 %470  ;;  %vm1775_vm12 = vcmp.ne.s32.totalorder %v671_v6, 0 }
  0xe1   :  { %v1717_v57 = vadd.f32 %v424_v46, %v328_v26  ;;  %v323_v46 = vadd.f32 %v307_v21, %v195_v1 }
  0xe3   :  { %2110 = vst [vmem:[#allocation2_spill] sm:$0xff] %v1717_v57  ;;  %v435_v50 = vadd.f32 %v419_v35, %v323_v46 }
  0xe4   :  { %v1720_v49 = vpop.permute.xlu1 %462  ;;  %v479_v60 = vpop.permute.xlu0 %478 }
  0xe5   :  { %v526_v20 = vsel %vm446_vm13, %v479_v60, 0.0  ;;  %v524_v60 = vsel %vm444_vm4, %v471_v55, 0.0  ;;  %v1782_v55 = vld [vmem:[%s2108_s4 + $0x10] sm:$0xff]  ;;  %vm554_vm13 = vcmp.eq.s32.totalorder %v1558_v8, 4  ;;  %v522_v28 = vsel %vm442_vm5, %v1720_v49, 0.0 }
  0xe6   :  { %v1722_v36 = vadd.f32 %v526_v20, %v430_v41  ;;  %v679_v6 = vunpack.c.2.s8 %v1782_v55  ;;  %vm450_vm5 = vcmp.eq.s32.totalorder %v1661_v62, 3 }
  0xe8   :  { %v467_v43 = vpop.permute.xlu1 %466  ;;  %v1724_v42 = vpop.permute.xlu0 %486  ;;  %vm695_vm0 = vcmp.ne.s32.totalorder %v679_v6, 0 }
  0xe9   :  { %v523_v61 = vsel %vm443_vm15, %v467_v43, 0.0  ;;  %vm445_vm15 = vcmp.eq.s32.totalorder %v1575_v16, 3 }
  0xea   :  { %v539_v12 = vadd.f32 %v523_v61, %v1628_v10  ;;  %v669_v61 = vunpack.c.0.s8 %v1760_v7 }
  0xec   :  { %v1726_v19 = vpop.permute.xlu1 %474  ;;  %v1728_v51 = vpop.permute.xlu0 %494  ;;  %vm685_vm14 = vcmp.ne.s32.totalorder %v669_v61, 0 }
  0xf0   :  { %v1730_v56 = vpop.permute.xlu1 %482  ;;  %v1732_v63 = vpop.permute.xlu0 %502 }
  0xf1   :  { %v527_v8 = vsel %vm447_vm1, %v1730_v56, 0.0  ;;  %vm562_vm1 = vcmp.eq.s32.totalorder %v1661_v62, 4  ;;  %v680_v62 = vunpack.c.3.s8 %v1782_v55 }
  0xf4   :  { %v491_v59 = vpop.permute.xlu1 %490  ;;  %v1734_v22 = vpop.permute.xlu0 %510 }
  0xf8   :  { %v499_v45 = vpop.permute.xlu1 %498  ;;  %v1736_v2 = vpop.permute.xlu0 %518 }
  0xf9   :  { %v531_v48 = vsel %vm451_vm8, %v499_v45, 0.0  ;;  %vm453_vm8 = vcmp.eq.s32.totalorder %v1540_v0, 3 }
  0xfc   :  { %v1738_v38 = vpop.permute.xlu1 %506 }
  0xfd   :  { %v1740_v41 = vpop.permute.xlu0 %574 }
  0xfe   :  { %v634_v49 = vsel %vm554_vm13, %v1740_v41, 0.0  ;;  %vm558_vm13 = vcmp.eq.s32.totalorder %v1573_v15, 4 }
 0x100   :  { %v1742_v27 = vpop.permute.xlu1 %514 }
 0x101   :  { %v1745_v31 = vpop.permute.xlu0 %586 }
 0x105   :  { %v571_v58 = vpop.permute.xlu1 %570  ;;  %v1751_v33 = vpop.permute.xlu0 %594 }
 0x106   :  { %v633_v34 = vsel %vm553_vm2, %v571_v58, 0.0  ;;  %v1124_v26 = vpop.f32.mrf.mxu0  ;;  %v529_v58 = vsel %vm449_vm6, %v491_v59, 0.0  ;;  %v1132_v47 = vpop.f32.mrf.mxu1  ;;  %v540_v59 = vadd.f32 %v524_v60, %v1649_v30  ;;  %vm559_vm2 = vcmp.eq.s32.totalorder %v1579_v18, 4 }
 0x107   :  { %v649_v4 = vadd.f32 %v633_v34, %v537_v37  ;;  %v545_v35 = vadd.f32 %v529_v58, %v1667_v53  ;;  %v547_v37 = vadd.f32 %v531_v48, %v435_v50  ;;  %v672_v53 = vunpack.c.3.s8 %v1760_v7 }
 0x108   :  { %v831_v21 = vpop.f32.mrf.mxu0  ;;  %v677_v48 = vunpack.c.0.s8 %v1782_v55  ;;  %v670_v50 = vunpack.c.1.s8 %v1760_v7  ;;  %v639_v56 = vsel %vm559_vm2, %v1751_v33, 0.0  ;;  %v525_v18 = vsel %vm445_vm15, %v1726_v19, 0.0 }
 0x109   :  { %v579_v52 = vpop.permute.xlu1 %578  ;;  %v603_v43 = vpop.permute.xlu0 %602  ;;  %v832_v46 = vadd.f32 %v831_v21, %v649_v4  ;;  %v538_v21 = vadd.f32 %v522_v28, %v1608_v40  ;;  %vm688_vm4 = vcmp.ne.s32.totalorder %v672_v53, 0  ;;  %v673_v40 = vunpack.c.0.s8 %v1803_v14 }
 0x10a   :  { %v635_v20 = vsel %vm555_vm7, %v579_v52, 0.0  ;;  %v641_v45 = vsel %vm561_vm9, %v603_v43, 0.0  ;;  %v1125_v43 = vpop.f32.mrf.mxu0  ;;  %vm693_vm6 = vcmp.ne.s32.totalorder %v677_v48, 0  ;;  %vm452_vm7 = vcmp.eq.s32.totalorder %v1673_v54, 3 }
 0x10b   :  { %v651_v57 = vadd.f32 %v635_v20, %v539_v12  ;;  %v1819_v10 = vsel %vm685_vm14, %v832_v46, -1e+09  ;;  %vm455_vm9 = vcmp.eq.s32.totalorder %v1548_v3, 3  ;;  %vm565_vm14 = vcmp.eq.s32.totalorder %v1540_v0, 4  ;;  %v1902_v0 = vld [vmem:[%s2108_s4 + $0x18] sm:$0xff] }
 0x10c   :  { %v834_v41 = vpop.f32.mrf.mxu0  ;;  %vm1863_vm2 = vcmp.ne.s32.totalorder %v673_v40, 0  ;;  %v530_v19 = vsel %vm450_vm5, %v1728_v51, 0.0  ;;  %vm567_vm15 = vcmp.eq.s32.totalorder %v1548_v3, 4  ;;  %v533_v53 = vsel %vm453_vm8, %v1738_v38, 0.0 }
 0x10d   :  { %v583_v34 = vpop.permute.xlu1 %582  ;;  %v840_v1 = vadd.f32 %v1124_v26, %v651_v57  ;;  %v611_v52 = vpop.permute.xlu0 %610  ;;  %v657_v57 = vadd.f32 %v641_v45, %v545_v35  ;;  %v541_v51 = vadd.f32 %v525_v18, %v1630_v11  ;;  %v678_v11 = vunpack.c.1.s8 %v1782_v55 }
 0x10e   :  { %v636_v12 = vsel %vm556_vm10, %v583_v34, 0.0  ;;  %v643_v30 = vsel %vm563_vm11, %v611_v52, 0.0  ;;  %v863_v26 = vpop.f32.mrf.mxu1  ;;  %vm557_vm10 = vcmp.eq.s32.totalorder %v1575_v16, 4  ;;  %vm1843_vm11 = vcmp.ne.s32.totalorder %v670_v50, 0  ;;  %v1128_v33 = vpop.f32.mrf.mxu0 }
 0x10f   :  { %v652_v20 = vadd.f32 %v636_v12, %v540_v59  ;;  %v1796_v29 = vsel %vm1775_vm12, %v840_v1, -1e+09  ;;  %v659_v60 = vadd.f32 %v643_v30, %v547_v37  ;;  %v675_v59 = vunpack.c.2.s8 %v1803_v14 }
 0x110   :  { %914 = vmax.xlane.f32.xlu0 %v1796_v29  ;;  %v864_v45 = vadd.f32 %v863_v26, %v657_v57  ;;  %v1823_v34 = vpop.f32.mrf.mxu1  ;;  %v543_v37 = vadd.f32 %v527_v8, %v1651_v44  ;;  %v532_v26 = vsel %vm452_vm7, %v1732_v63, 0.0  ;;  %v637_v28 = vsel %vm557_vm10, %v1745_v31, 0.0 }
 0x111   :  { %v1809_v58 = vpop.permute.xlu1 %590  ;;  %v872_v4 = vadd.f32 %v1132_v47, %v659_v60  ;;  %v843_v61 = vadd.f32 %v1125_v43, %v652_v20  ;;  %v650_v47 = vadd.f32 %v634_v49, %v538_v21  ;;  %v619_v46 = vpop.permute.xlu0 %618  ;;  %vm1851_vm12 = vcmp.ne.s32.totalorder %v675_v59, 0 }
 0x112   :  { %v866_v52 = vpop.f32.mrf.mxu1  ;;  %v1848_v20 = vsel %vm693_vm6, %v864_v45, -1e+09  ;;  %v655_v60 = vadd.f32 %v639_v56, %v543_v37  ;;  %v546_v50 = vadd.f32 %v530_v19, %v1690_v23  ;;  %v548_v38 = vadd.f32 %v532_v26, %v1704_v13  ;;  %v847_v49 = vpop.f32.mrf.mxu0 }
 0x113   :  { %v1825_v1 = vsel %vm695_vm0, %v872_v4, -1e+09  ;;  %v1841_v6 = vsel %vm688_vm4, %v843_v61, -1e+09  ;;  %v835_v12 = vadd.f32 %v834_v41, %v650_v47  ;;  %vm560_vm0 = vcmp.eq.s32.totalorder %v1577_v17, 4 }
 0x114   :  { %910 = vmax.xlane.f32.xlu0 %v1819_v10  ;;  %930 = vmax.xlane.f32.xlu1 %v1825_v1  ;;  %vm564_vm4 = vcmp.eq.s32.totalorder %v1673_v54, 4  ;;  %v856_v43 = vadd.f32 %v1128_v33, %v655_v60  ;;  %v1136_v48 = vpop.f32.mrf.mxu1  ;;  %v645_v16 = vsel %vm565_vm14, %v619_v46, 0.0  ;;  %v528_v61 = vsel %vm448_vm3, %v1724_v42, 0.0  ;;  %v1129_v30 = vpop.f32.mrf.mxu0 }
 0x115   :  { %v599_v7 = vpop.permute.xlu1 %598  ;;  %v1885_v4 = vsel %vm1843_vm11, %v835_v12, -1e+09  ;;  %v549_v59 = vadd.f32 %v533_v53, %v1693_v24  ;;  %v653_v21 = vadd.f32 %v637_v28, %v541_v51  ;;  %v627_v45 = vpop.permute.xlu0 %626  ;;  %v535_v13 = vsel %vm455_vm9, %v1742_v27, 0.0 }
 0x116   :  { %vm1907_vm5 = vcmp.ne.s32.totalorder %v680_v62, 0  ;;  %v640_v54 = vsel %vm560_vm0, %v599_v7, 0.0  ;;  %v1915_v40 = vsel %vm1851_vm12, %v856_v43, -1e+09  ;;  %v544_v47 = vadd.f32 %v528_v61, %v1679_v5  ;;  %v879_v56 = vpop.f32.mrf.mxu1  ;;  %v850_v26 = vpop.f32.mrf.mxu0 }
 0x117   :  { %v848_v24 = vadd.f32 %v847_v49, %v653_v21  ;;  %v661_v41 = vadd.f32 %v645_v16, %v549_v59  ;;  %v647_v27 = vsel %vm567_vm15, %v627_v45, 0.0  ;;  %v681_v37 = vunpack.c.0.s8 %v1902_v0 }
 0x118   :  { %916 = vmax.xlane.f32.xlu0 %v1841_v6  ;;  %926 = vmax.xlane.f32.xlu1 %v1848_v20  ;;  %vm454_vm3 = vcmp.eq.s32.totalorder %v1685_v9, 3  ;;  %v551_v17 = vadd.f32 %v535_v13, %v1707_v32  ;;  %v676_v7 = vunpack.c.3.s8 %v1803_v14  ;;  %v656_v12 = vadd.f32 %v640_v54, %v544_v47  ;;  %v1137_v53 = vpop.f32.mrf.mxu1 }
 0x119   :  { %v607_v44 = vpop.permute.xlu1 %606  ;;  %vm694_vm6 = vcmp.ne.s32.totalorder %v678_v11, 0  ;;  %v880_v18 = vadd.f32 %v879_v56, %v661_v41  ;;  %v1935_v32 = vsel %vm1863_vm2, %v848_v24, -1e+09  ;;  %vm566_vm7 = vcmp.eq.s32.totalorder %v1685_v9, 4 }
 0x11a   :  { %v642_v63 = vsel %vm562_vm1, %v607_v44, 0.0  ;;  %v663_v33 = vadd.f32 %v647_v27, %v551_v17  ;;  %vm697_vm8 = vcmp.ne.s32.totalorder %v681_v37, 0  ;;  %v534_v15 = vsel %vm454_vm3, %v1734_v22, 0.0 }
 0x11b   :  { %v658_v55 = vadd.f32 %v642_v63, %v546_v50  ;;  %vm456_vm9 = vcmp.eq.s32.totalorder %v1700_v25, 3  ;;  %v859_v57 = vadd.f32 %v1129_v30, %v656_v12  ;;  %v674_v19 = vunpack.c.1.s8 %v1803_v14  ;;  %v882_v63 = vpop.f32.mrf.mxu1 }
 0x11c   :  { %912 = vmax.xlane.f32.xlu1 %v1885_v4  ;;  %v1949_v28 = vsel %vm697_vm8, %v880_v18, -1e+09  ;;  %v888_v62 = vadd.f32 %v1136_v48, %v663_v33  ;;  %vm692_vm10 = vcmp.ne.s32.totalorder %v676_v7, 0  ;;  %v550_v9 = vadd.f32 %v534_v15, %v1713_v39 }
 0x11d   :  { %v615_v31 = vpop.permute.xlu1 %614  ;;  %v867_v3 = vadd.f32 %v866_v52, %v658_v55  ;;  %v683_v52 = vunpack.c.2.s8 %v1902_v0  ;;  %vm568_vm11 = vcmp.eq.s32.totalorder %v1700_v25, 4  ;;  %v1958_v43 = vsel %vm692_vm10, %v859_v57, -1e+09 }
 0x11e   :  { %v644_v23 = vsel %vm564_vm4, %v615_v31, 0.0  ;;  %v682_v39 = vunpack.c.1.s8 %v1902_v0  ;;  %v684_v31 = vunpack.c.3.s8 %v1902_v0 }
 0x11f   :  { %v660_v8 = vadd.f32 %v644_v23, %v548_v38  ;;  %v1946_v44 = vsel %vm694_vm6, %v867_v3, -1e+09  ;;  %vm699_vm12 = vcmp.ne.s32.totalorder %v683_v52, 0  ;;  %v2121_v38 = vld [vmem:[#allocation2_spill] sm:$0xff] }
 0x120   :  { %922 = vmax.xlane.f32.xlu1 %v1915_v40  ;;  %v1960_v48 = vsel %vm699_vm12, %v888_v62, -1e+09  ;;  %vm698_vm14 = vcmp.ne.s32.totalorder %v682_v39, 0  ;;  %vm700_vm0 = vcmp.ne.s32.totalorder %v684_v31, 0 }
 0x121   :  { %v875_v35 = vadd.f32 %v1823_v34, %v660_v8  ;;  %v623_v46 = vpop.permute.xlu1 %622  ;;  %v638_v34 = vsel %vm558_vm13, %v1809_v58, 0.0  ;;  %vm690_vm13 = vcmp.ne.s32.totalorder %v674_v19, 0 }
 0x122   :  { %v654_v58 = vadd.f32 %v638_v34, %v1722_v36  ;;  %v646_v60 = vsel %vm566_vm7, %v623_v46, 0.0  ;;  %v536_v36 = vsel %vm456_vm9, %v1736_v2, 0.0 }
 0x123   :  { %v1928_v5 = vsel %vm1907_vm5, %v875_v35, -1e+09  ;;  %v662_v51 = vadd.f32 %v646_v60, %v550_v9  ;;  %v552_v49 = vadd.f32 %v536_v36, %v2121_v38 }
 0x124   :  { %932 = vmax.xlane.f32.xlu0 %v1928_v5  ;;  %918 = vmax.xlane.f32.xlu1 %v1935_v32  ;;  %v851_v14 = vadd.f32 %v850_v26, %v654_v58 }
 0x125   :  { %v631_v22 = vpop.permute.xlu1 %630  ;;  %v883_v16 = vadd.f32 %v882_v63, %v662_v51 }
 0x126   :  { %v648_v50 = vsel %vm568_vm11, %v631_v22, 0.0  ;;  %v1966_v2 = vsel %vm690_vm13, %v851_v14, -1e+09 }
 0x127   :  { %v664_v25 = vadd.f32 %v648_v50, %v552_v49  ;;  %v1970_v11 = vsel %vm698_vm14, %v883_v16, -1e+09 }
 0x128   :  { %928 = vmax.xlane.f32.xlu0 %v1946_v44  ;;  %934 = vmax.xlane.f32.xlu1 %v1949_v28 }
 0x129   :  { %v891_v61 = vadd.f32 %v1137_v53, %v664_v25 }
 0x12b   :  { %v1973_v59 = vsel %vm700_vm0, %v891_v61, -1e+09 }
 0x12c   :  { %924 = vmax.xlane.f32.xlu0 %v1958_v43  ;;  %938 = vmax.xlane.f32.xlu1 %v1960_v48 }
 0x130   :  { %920 = vmax.xlane.f32.xlu0 %v1966_v2 }
 0x134   :  { %936 = vmax.xlane.f32.xlu0 %v1970_v11 }
 0x138   :  { %940 = vmax.xlane.f32.xlu0 %v1973_v59 }
 0x199   :  { %v915_v21 = vpop.xlane.xlu0 %914 }
 0x19a   :  { %v944_v45 = vsub.f32 %v1796_v29, %v915_v21 }
 0x19c   :  { %v962_v23 = vmul.f32 1.442695, %v944_v45 }
 0x19d   :  { %v911_v13 = vpop.xlane.xlu0 %910  ;;  %v931_v55 = vpop.xlane.xlu1 %930 }
 0x19e   :  { %1185 = vpow2.f32 %v962_v23  ;;  %v952_v8 = vsub.f32 %v1825_v1, %v931_v55  ;;  %v942_v0 = vsub.f32 %v1819_v10, %v911_v13 }
 0x1a0   :  { %v978_v42 = vmul.f32 1.442695, %v952_v8  ;;  %v958_v47 = vmul.f32 1.442695, %v942_v0 }
 0x1a1   :  { %v917_v24 = vpop.xlane.xlu0 %916  ;;  %v927_v41 = vpop.xlane.xlu1 %926 }
 0x1a2   :  { %v945_v54 = vsub.f32 %v1841_v6, %v917_v24  ;;  %1187 = vpow2.f32 %v978_v42  ;;  %v950_v56 = vsub.f32 %v1848_v20, %v927_v41 }
 0x1a4   :  { %v964_v27 = vmul.f32 1.442695, %v945_v54  ;;  %v974_v35 = vmul.f32 1.442695, %v950_v56 }
 0x1a5   :  { %v913_v29 = vpop.xlane.xlu1 %912 }
 0x1a6   :  { %1189 = vpow2.f32 %v964_v27  ;;  %v943_v6 = vsub.f32 %v1885_v4, %v913_v29 }
 0x1a7   :  { %1191 = vpow2.f32 %v958_v47 }
 0x1a8   :  { %1193 = vpow2.f32 %v974_v35 }
 0x1a9   :  { %v923_v37 = vpop.xlane.xlu1 %922 }
 0x1aa   :  { %v948_v10 = vsub.f32 %v1915_v40, %v923_v37  ;;  %v960_v40 = vmul.f32 1.442695, %v943_v6 }
 0x1ab   :  { %v1981_v17 = vpop.eup %1185 }
 0x1ac   :  { %994 = vadd.xlane.f32.xlu1 %v1981_v17  ;;  %v970_v1 = vmul.f32 1.442695, %v948_v10 }
 0x1ad   :  { %v933_v7 = vpop.xlane.xlu0 %932  ;;  %v919_v12 = vpop.xlane.xlu1 %918 }
 0x1ae   :  { %v953_v20 = vsub.f32 %v1928_v5, %v933_v7  ;;  %1195 = vpow2.f32 %v970_v1  ;;  %v946_v46 = vsub.f32 %v1935_v32, %v919_v12 }
 0x1af   :  { %v1988_v3 = vpop.eup %1187 }
 0x1b0   :  { %v980_v34 = vmul.f32 1.442695, %v953_v20  ;;  %v966_v30 = vmul.f32 1.442695, %v946_v46  ;;  %1010 = vadd.xlane.f32.xlu1 %v1988_v3 }
 0x1b1   :  { %v929_v18 = vpop.xlane.xlu0 %928  ;;  %v935_v33 = vpop.xlane.xlu1 %934 }
 0x1b2   :  { %1197 = vpow2.f32 %v980_v34  ;;  %v951_v52 = vsub.f32 %v1946_v44, %v929_v18  ;;  %v954_v4 = vsub.f32 %v1949_v28, %v935_v33 }
 0x1b3   :  { %v1992_v15 = vpop.eup %1189  ;;  %1199 = vpow2.f32 %v966_v30 }
 0x1b4   :  { %v1995_v5 = vpop.eup %1191  ;;  %996 = vadd.xlane.f32.xlu0 %v1992_v15  ;;  %v982_v32 = vmul.f32 1.442695, %v954_v4  ;;  %1201 = vpow2.f32 %v960_v40  ;;  %v976_v57 = vmul.f32 1.442695, %v951_v52 }
 0x1b5   :  { %990 = vadd.xlane.f32.xlu1 %v1995_v5  ;;  %v925_v58 = vpop.xlane.xlu0 %924  ;;  %v939_v19 = vpop.xlane.xlu1 %938 }
 0x1b6   :  { %v949_v26 = vsub.f32 %v1958_v43, %v925_v58  ;;  %1203 = vpow2.f32 %v982_v32  ;;  %v956_v44 = vsub.f32 %v1960_v48, %v939_v19  ;;  %v2001_v60 = vpop.eup %1193 }
 0x1b7   :  { %1205 = vpow2.f32 %v976_v57 }
 0x1b8   :  { %v986_v53 = vmul.f32 1.442695, %v956_v44  ;;  %v972_v62 = vmul.f32 1.442695, %v949_v26 }
 0x1b9   :  { %1006 = vadd.xlane.f32.xlu1 %v2001_v60  ;;  %v921_v28 = vpop.xlane.xlu0 %920 }
 0x1ba   :  { %v947_v9 = vsub.f32 %v1966_v2, %v921_v28  ;;  %1207 = vpow2.f32 %v986_v53 }
 0x1bb   :  { %v2005_v22 = vpop.eup %1195  ;;  %1209 = vpow2.f32 %v972_v62 }
 0x1bc   :  { %v968_v14 = vmul.f32 1.442695, %v947_v9 }
 0x1bd   :  { %1002 = vadd.xlane.f32.xlu1 %v2005_v22  ;;  %v937_v36 = vpop.xlane.xlu0 %936 }
 0x1be   :  { %v955_v51 = vsub.f32 %v1970_v11, %v937_v36  ;;  %1211 = vpow2.f32 %v968_v14 }
 0x1bf   :  { %v2009_v43 = vpop.eup %1197 }
 0x1c0   :  { %v2011_v63 = vpop.eup %1199  ;;  %1012 = vadd.xlane.f32.xlu0 %v2009_v43  ;;  %v984_v48 = vmul.f32 1.442695, %v955_v51 }
 0x1c1   :  { %998 = vadd.xlane.f32.xlu1 %v2011_v63  ;;  %v941_v50 = vpop.xlane.xlu0 %940  ;;  %v2016_v38 = vpop.eup %1201 }
 0x1c2   :  { %v957_v39 = vsub.f32 %v1973_v59, %v941_v50  ;;  %1213 = vpow2.f32 %v984_v48 }
 0x1c3   :  { %v2018_v49 = vpop.eup %1203 }
 0x1c4   :  { %992 = vadd.xlane.f32.xlu0 %v2016_v38  ;;  %v988_v16 = vmul.f32 1.442695, %v957_v39  ;;  %v2022_v25 = vpop.eup %1205 }
 0x1c5   :  { %1014 = vadd.xlane.f32.xlu1 %v2018_v49 }
 0x1c6   :  { %1215 = vpow2.f32 %v988_v16 }
 0x1c7   :  { %v2024_v2 = vpop.eup %1207 }
 0x1c8   :  { %1008 = vadd.xlane.f32.xlu0 %v2022_v25  ;;  %v2028_v31 = vpop.eup %1209 }
 0x1c9   :  { %1018 = vadd.xlane.f32.xlu1 %v2024_v2 }
 0x1cb   :  { %v2031_v11 = vpop.eup %1211 }
 0x1cc   :  { %1004 = vadd.xlane.f32.xlu0 %v2028_v31 }
 0x1cf   :  { %v2034_v61 = vpop.eup %1213 }
 0x1d0   :  { %1000 = vadd.xlane.f32.xlu0 %v2031_v11 }
 0x1d3   :  { %v2037_v59 = vpop.eup %1215 }
 0x1d4   :  { %1016 = vadd.xlane.f32.xlu0 %v2034_v61 }
 0x1d8   :  { %1020 = vadd.xlane.f32.xlu0 %v2037_v59 }
 0x235   :  { %v995_v21 = vpop.xlane.xlu1 %994 }
 0x236   :  { %1217 = vrcp.f32 %v995_v21 }
 0x239   :  { %v1011_v45 = vpop.xlane.xlu1 %1010 }
 0x23a   :  { %1219 = vrcp.f32 %v1011_v45 }
 0x23d   :  { %v997_v23 = vpop.xlane.xlu0 %996 }
 0x23e   :  { %v991_v13 = vpop.xlane.xlu1 %990  ;;  %1221 = vrcp.f32 %v997_v23 }
 0x23f   :  { %1223 = vrcp.f32 %v991_v13 }
 0x242   :  { %v1007_v55 = vpop.xlane.xlu1 %1006 }
 0x243   :  { %v1218_v8 = vpop.eup %1217  ;;  %1225 = vrcp.f32 %v1007_v55 }
 0x244   :  { %v1040_v0 = vmul.f32 %v1218_v8, %v1981_v17 }
 0x246   :  { %1056 = vst [vmem:[%s2109_s5 + $0x10] sm:$0xff] %v1040_v0  ;;  %v1003_v42 = vpop.xlane.xlu1 %1002 }
 0x247   :  { %1227 = vrcp.f32 %v1003_v42  ;;  %v1220_v24 = vpop.eup %1219 }
 0x248   :  { %v1048_v41 = vmul.f32 %v1220_v24, %v1988_v3 }
 0x249   :  { %v1013_v54 = vpop.xlane.xlu0 %1012 }
 0x24a   :  { %v999_v47 = vpop.xlane.xlu1 %998  ;;  %1229 = vrcp.f32 %v1013_v54  ;;  %1064 = vst [vmem:[%s2109_s5 + $0x50] sm:$0xff] %v1048_v41 }
 0x24b   :  { %v1222_v56 = vpop.eup %1221  ;;  %1231 = vrcp.f32 %v999_v47 }
 0x24c   :  { %v1224_v27 = vpop.eup %1223  ;;  %v1041_v29 = vmul.f32 %v1222_v56, %v1992_v15 }
 0x24d   :  { %v1038_v35 = vmul.f32 %v1224_v27, %v1995_v5  ;;  %v993_v37 = vpop.xlane.xlu0 %992 }
 0x24e   :  { %1057 = vst [vmem:[%s2109_s5 + $0x18] sm:$0xff] %v1041_v29  ;;  %v1015_v17 = vpop.xlane.xlu1 %1014  ;;  %1233 = vrcp.f32 %v993_v37 }
 0x24f   :  { %1054 = vst [vmem:[%s2109_s5] sm:$0xff] %v1038_v35  ;;  %1235 = vrcp.f32 %v1015_v17 }
 0x250   :  { %v1226_v10 = vpop.eup %1225 }
 0x251   :  { %v1046_v1 = vmul.f32 %v1226_v10, %v2001_v60  ;;  %v1009_v7 = vpop.xlane.xlu0 %1008 }
 0x252   :  { %v1019_v6 = vpop.xlane.xlu1 %1018  ;;  %1237 = vrcp.f32 %v1009_v7 }
 0x253   :  { %1062 = vst [vmem:[%s2109_s5 + $0x40] sm:$0xff] %v1046_v1  ;;  %1239 = vrcp.f32 %v1019_v6 }
 0x254   :  { %v1228_v12 = vpop.eup %1227 }
 0x255   :  { %v1044_v20 = vmul.f32 %v1228_v12, %v2005_v22  ;;  %v1005_v46 = vpop.xlane.xlu0 %1004 }
 0x256   :  { %1241 = vrcp.f32 %v1005_v46 }
 0x257   :  { %v1230_v3 = vpop.eup %1229  ;;  %1060 = vst [vmem:[%s2109_s5 + $0x30] sm:$0xff] %v1044_v20 }
 0x258   :  { %v1232_v34 = vpop.eup %1231  ;;  %v1049_v30 = vmul.f32 %v1230_v3, %v2009_v43 }
 0x259   :  { %v1042_v18 = vmul.f32 %v1232_v34, %v2011_v63  ;;  %v1001_v40 = vpop.xlane.xlu0 %1000 }
 0x25a   :  { %1065 = vst [vmem:[%s2109_s5 + $0x58] sm:$0xff] %v1049_v30  ;;  %1243 = vrcp.f32 %v1001_v40 }
 0x25b   :  { %v1234_v33 = vpop.eup %1233  ;;  %1058 = vst [vmem:[%s2109_s5 + $0x20] sm:$0xff] %v1042_v18 }
 0x25c   :  { %v1236_v52 = vpop.eup %1235  ;;  %v1039_v15 = vmul.f32 %v1234_v33, %v2016_v38 }
 0x25d   :  { %v1050_v4 = vmul.f32 %v1236_v52, %v2018_v49  ;;  %v1017_v5 = vpop.xlane.xlu0 %1016 }
 0x25e   :  { %1055 = vst [vmem:[%s2109_s5 + $0x8] sm:$0xff] %v1039_v15  ;;  %1245 = vrcp.f32 %v1017_v5 }
 0x25f   :  { %v1238_v32 = vpop.eup %1237  ;;  %1066 = vst [vmem:[%s2109_s5 + $0x60] sm:$0xff] %v1050_v4 }
 0x260   :  { %v1240_v58 = vpop.eup %1239  ;;  %v1047_v57 = vmul.f32 %v1238_v32, %v2022_v25 }
 0x261   :  { %v1052_v19 = vmul.f32 %v1240_v58, %v2024_v2  ;;  %v1021_v26 = vpop.xlane.xlu0 %1020 }
 0x262   :  { %1063 = vst [vmem:[%s2109_s5 + $0x48] sm:$0xff] %v1047_v57  ;;  %1247 = vrcp.f32 %v1021_v26 }
 0x263   :  { %v1242_v44 = vpop.eup %1241  ;;  %1068 = vst [vmem:[%s2109_s5 + $0x70] sm:$0xff] %v1052_v19 }
 0x264   :  { %v1045_v60 = vmul.f32 %v1242_v44, %v2028_v31 }
 0x266   :  { %1061 = vst [vmem:[%s2109_s5 + $0x38] sm:$0xff] %v1045_v60 }
 0x267   :  { %v1244_v53 = vpop.eup %1243 }
 0x268   :  { %v1043_v28 = vmul.f32 %v1244_v53, %v2031_v11 }
 0x26a   :  { %1059 = vst [vmem:[%s2109_s5 + $0x28] sm:$0xff] %v1043_v28 }
 0x26b   :  { %v1246_v62 = vpop.eup %1245 }
 0x26c   :  { %v1051_v9 = vmul.f32 %v1246_v62, %v2034_v61 }
 0x26e   :  { %1067 = vst [vmem:[%s2109_s5 + $0x68] sm:$0xff] %v1051_v9 }
 0x26f   :  { %v1248_v22 = vpop.eup %1247 }
 0x270   :  { %v1053_v36 = vmul.f32 %v1248_v22, %v2037_v59 }
 0x272   :  { %1069 = vst [vmem:[%s2109_s5 + $0x78] sm:$0xff] %v1053_v36 }

</bundles_post_ra>
